<compile_context>
chip_gen: v7x
topology: tpu7x:2x2x1
jax: 0.10.0
libtpu: 0.0.40
codegen_flags: <defaults>
</compile_context>

<pallas_src>
import jax
import jax.numpy as jnp
from jax import lax
from jax.experimental import pallas as pl
from jax.experimental.pallas import tpu as pltpu

# TODO(synk): WordPiece subword tokenization (string -> ids) has no Pallas
# equivalent; inputs to the kernel are pre-tokenized integer id sequences.

CLS_ID = 101   # BERT [CLS]
SEP_ID = 102   # BERT [SEP]
PAD_ID = 0     # BERT [PAD]
MAX_LENGTH = 77

# Default batch rows per grid step (multiple of 16 so int16 inputs tile too).
BATCH_TILE = 8192


def _round_up(x, m):
    return ((x + m - 1) // m) * m


def _default_config():
    """(batch_tile, vmem_limit_bytes) per chip generation.

    v7x has 64 MiB VMEM per TensorCore -> keep 8192 / 32 MiB.
    v5e/v6e have 128 MiB VMEM -> 16384 / 64 MiB amortizes step overhead more.
    """
    batch_tile, vmem_limit = BATCH_TILE, 32 * 1024 * 1024
    try:
        if pltpu.get_tpu_info().vmem_capacity_bytes >= 96 * 1024 * 1024:
            batch_tile, vmem_limit = 16384, 64 * 1024 * 1024
    except Exception:
        pass  # unknown chip / field mismatch: keep conservative defaults
    return batch_tile, vmem_limit


def _pack_kernel(ids_ref, len_ref, out_ref):
    """Builds BERT input_ids: [CLS] + ids[:eff] + [SEP] + [PAD] * rest.

    ids_ref : [TB, L_in]  int16/int32 raw wordpiece ids (any right-padding)
    len_ref : [TB, 1]     int32 number of valid raw wordpiece ids per row
    out_ref : [TB, L_out] int32 packed input_ids (L_out == max_length)
    """
    tb, l_out = out_ref.shape
    l_in = ids_ref.shape[1]

    ids = ids_ref[...].astype(jnp.int32)                       # [TB, L_in]
    # Truncation: room for [CLS] + [SEP], never more ids than provided.
    eff = jnp.clip(len_ref[...], 0, min(l_in, l_out - 2))      # [TB, 1]

    # Token position 0: [CLS].
    out_ref[:, 0:1] = jnp.full((tb, 1), CLS_ID, jnp.int32)

    # Token positions 1 .. l_in: raw ids / [SEP] / [PAD].  Since eff <= l_in,
    # out[:, p] == ids[:, p - 1] exactly when p <= eff; the 1-lane shift is
    # provided by the static store offset (no roll / concatenate needed).
    if l_in > 0:
        pos_a = lax.broadcasted_iota(jnp.int32, (tb, l_in), 1) + 1
        out_ref[:, 1:1 + l_in] = jnp.where(
            pos_a <= eff,
            ids,
            jnp.where(pos_a == eff + 1, jnp.int32(SEP_ID), jnp.int32(PAD_ID)),
        )

    # Token positions l_in+1 .. l_out-1: only [SEP] / [PAD] can appear here.
    tail = l_out - 1 - l_in
    if tail > 0:
        pos_b = lax.broadcasted_iota(jnp.int32, (tb, tail), 1) + (1 + l_in)
        out_ref[:, 1 + l_in:] = jnp.where(
            pos_b == eff + 1, jnp.int32(SEP_ID), jnp.int32(PAD_ID))


def bert_tokenizer_forward(token_ids, lengths, max_length=MAX_LENGTH,
                           batch_tile=None, vmem_limit_bytes=None):
    """Pallas-backed equivalent of BERTTokenizer.forward.

    token_ids : [B, L_raw] int32 (or int16) -- raw wordpiece ids per example.
    lengths   : [B] int32                   -- number of valid ids per example.
    returns   : [B, max_length] int32 input_ids tensor.
    """
    token_ids = jnp.asarray(token_ids)
    if token_ids.dtype not in (jnp.int16, jnp.int32):
        token_ids = token_ids.astype(jnp.int32)
    lengths = jnp.asarray(lengths, jnp.int32)
    B, l_raw = token_ids.shape

    # Only the first max_length - 2 raw ids can ever appear in the output.
    if l_raw > max_length - 2:
        token_ids = token_ids[:, : max_length - 2]
        l_raw = max_length - 2
    lengths2d = lengths.reshape(B, 1)

    if batch_tile is None or vmem_limit_bytes is None:
        d_tile, d_vmem = _default_config()
        batch_tile = d_tile if batch_tile is None else batch_tile
        vmem_limit_bytes = d_vmem if vmem_limit_bytes is None else vmem_limit_bytes

    # Tile choice: tiny batches use one full-array tile (always legal); larger
    # batches get >= 2 (typically 4) grid steps -- multiple of 16 rows -- so
    # both v7x TensorCores participate and DMA double-buffering has work.
    if B <= 16:
        tb = B
    else:
        tb = min(batch_tile, max(16, _round_up(pl.cdiv(B, 4), 16)))
    grid = (pl.cdiv(B, tb),)

    itemsize = token_ids.dtype.itemsize
    cost = pl.CostEstimate(
        flops=5 * B * max_length,
        transcendentals=0,
        bytes_accessed=B * l_raw * itemsize + B * 4 + B * max_length * 4,
    )

    return pl.pallas_call(
        _pack_kernel,
        out_shape=jax.ShapeDtypeStruct((B, max_length), jnp.int32),
        grid=grid,
        in_specs=[
            pl.BlockSpec((tb, l_raw), lambda i: (i, 0)),
            pl.BlockSpec((tb, 1), lambda i: (i, 0)),
        ],
        out_specs=pl.BlockSpec((tb, max_length), lambda i: (i, 0)),
        compiler_params=pltpu.CompilerParams(
            dimension_semantics=("parallel",),
            vmem_limit_bytes=vmem_limit_bytes,
        ),
        cost_estimate=cost,
    )(token_ids, lengths2d)


def _reference(token_ids, lengths, max_length=MAX_LENGTH):
    """Pure-numpy reference of HF padding='max_length', truncation=True."""
    import numpy as np
    token_ids = np.asarray(token_ids)
    lengths = np.asarray(lengths)
    B, l_raw = token_ids.shape
    out = np.full((B, max_length), PAD_ID, dtype=np.int32)
    for b in range(B):
        eff = int(min(lengths[b], l_raw, max_length - 2))
        out[b, 0] = CLS_ID
        out[b, 1:1 + eff] = token_ids[b, :eff]
        out[b, 1 + eff] = SEP_ID
    return out


if __name__ == "__main__":
    import numpy as np

    key = jax.random.PRNGKey(0)
    k_ids, k_len, k_ids2, k_len2 = jax.random.split(key, 4)

    # Primary small-shape test: batch of 2 "sentences", 8 raw wordpiece ids.
    B, L_RAW = 2, 8
    raw_ids = jax.random.randint(k_ids, (B, L_RAW), 1000, 30000, dtype=jnp.int32)
    lengths = jax.random.randint(k_len, (B,), 1, L_RAW + 1, dtype=jnp.int32)

    tokens = jax.block_until_ready(bert_tokenizer_forward(raw_ids, lengths))
    ref = _reference(np.array(raw_ids), np.array(lengths))
    assert tokens.shape == (B, MAX_LENGTH), tokens.shape
    assert tokens.dtype == jnp.int32
    np.testing.assert_array_equal(np.array(tokens), ref)

    # int16 input path (halves the dominant HBM read); same expected output.
    tokens16 = jax.block_until_ready(
        bert_tokenizer_forward(raw_ids.astype(jnp.int16), lengths))
    np.testing.assert_array_equal(np.array(tokens16), ref)

    # Multi-step grid path (>= 2 steps, ragged last block), still small.
    B2, L2 = 40, 8
    raw_ids2 = jax.random.randint(k_ids2, (B2, L2), 1000, 30000, dtype=jnp.int32)
    lengths2 = jax.random.randint(k_len2, (B2,), 0, L2 + 1, dtype=jnp.int32)
    tokens2 = jax.block_until_ready(bert_tokenizer_forward(raw_ids2, lengths2))
    np.testing.assert_array_equal(
        np.array(tokens2), _reference(np.array(raw_ids2), np.array(lengths2)))

    print("KERNEL_OK")
</pallas_src>

<mosaic_0001>
module attributes {stable_mosaic.version = 11 : i64} {
  func.func @_pack_kernel(%arg0: i32, %arg1: memref<2x8xi32, #tpu.memory_space<vmem>>, %arg2: memref<2x1xi32, #tpu.memory_space<vmem>>, %arg3: memref<2x77xi32, #tpu.memory_space<vmem>>) attributes {dimension_semantics = [#tpu.dimension_semantics<parallel>], iteration_bounds = array<i64: 1>, scalar_prefetch = 0 : i64, scratch_operands = 0 : i64, tpu.core_type = #tpu.core_type<tc>, window_params = [{transform_indices = @transform_0, window_bounds = array<i64: 2, 8>}, {transform_indices = @transform_1, window_bounds = array<i64: 2, 1>}, {transform_indices = @transform_2, window_bounds = array<i64: 2, 77>}]} {
    %c0 = arith.constant 0 : index
    %c0_0 = arith.constant 0 : index
    %0 = vector.load %arg1[%c0, %c0_0] : memref<2x8xi32, #tpu.memory_space<vmem>>, vector<2x8xi32>
    %c0_1 = arith.constant 0 : index
    %c0_2 = arith.constant 0 : index
    %1 = vector.load %arg2[%c0_1, %c0_2] : memref<2x1xi32, #tpu.memory_space<vmem>>, vector<2x1xi32>
    %c0_i32 = arith.constant 0 : i32
    %c8_i32 = arith.constant 8 : i32
    %2 = vector.broadcast %c0_i32 : i32 to vector<2x1xi32>
    %3 = arith.maxsi %2, %1 : vector<2x1xi32>
    %4 = vector.broadcast %c8_i32 : i32 to vector<2x1xi32>
    %5 = arith.minsi %4, %3 : vector<2x1xi32>
    %c101_i32 = arith.constant 101 : i32
    %6 = vector.broadcast %c101_i32 : i32 to vector<2x1xi32>
    %c0_3 = arith.constant 0 : index
    %c0_4 = arith.constant 0 : index
    %7 = vector.load %arg3[%c0_3, %c0_4] : memref<2x77xi32, #tpu.memory_space<vmem>>, vector<2x1xi32>
    tpu.vector_store %arg3[%c0_3, %c0_4], %6 {strides = array<i32>} : memref<2x77xi32, #tpu.memory_space<vmem>>, vector<2x1xi32>,
    %8 = tpu.iota {dimensions = array<i32: 1>} : vector<2x8xi32>
    %c1_i32 = arith.constant 1 : i32
    %9 = vector.broadcast %c1_i32 : i32 to vector<2x8xi32>
    %10 = arith.addi %8, %9 : vector<2x8xi32>
    %11 = vector.broadcast %5 : vector<2x1xi32> to vector<2x8xi32>
    %12 = arith.cmpi sle, %10, %11 : vector<2x8xi32>
    %c1_i32_5 = arith.constant 1 : i32
    %13 = vector.broadcast %c1_i32_5 : i32 to vector<2x1xi32>
    %14 = arith.addi %5, %13 : vector<2x1xi32>
    %15 = vector.broadcast %14 : vector<2x1xi32> to vector<2x8xi32>
    %16 = arith.cmpi eq, %10, %15 : vector<2x8xi32>
    %c102_i32 = arith.constant 102 : i32
    %c0_i32_6 = arith.constant 0 : i32
    %17 = vector.broadcast %c102_i32 : i32 to vector<2x8xi32>
    %18 = vector.broadcast %c0_i32_6 : i32 to vector<2x8xi32>
    %19 = arith.select %16, %17, %18 : vector<2x8xi1>, vector<2x8xi32>
    %20 = arith.select %12, %0, %19 : vector<2x8xi1>, vector<2x8xi32>
    %c0_7 = arith.constant 0 : index
    %c1 = arith.constant 1 : index
    %21 = vector.load %arg3[%c0_7, %c1] : memref<2x77xi32, #tpu.memory_space<vmem>>, vector<2x8xi32>
    tpu.vector_store %arg3[%c0_7, %c1], %20 {strides = array<i32>} : memref<2x77xi32, #tpu.memory_space<vmem>>, vector<2x8xi32>,
    %22 = tpu.iota {dimensions = array<i32: 1>} : vector<2x68xi32>
    %c9_i32 = arith.constant 9 : i32
    %23 = vector.broadcast %c9_i32 : i32 to vector<2x68xi32>
    %24 = arith.addi %22, %23 : vector<2x68xi32>
    %c1_i32_8 = arith.constant 1 : i32
    %25 = vector.broadcast %c1_i32_8 : i32 to vector<2x1xi32>
    %26 = arith.addi %5, %25 : vector<2x1xi32>
    %27 = vector.broadcast %26 : vector<2x1xi32> to vector<2x68xi32>
    %28 = arith.cmpi eq, %24, %27 : vector<2x68xi32>
    %c102_i32_9 = arith.constant 102 : i32
    %c0_i32_10 = arith.constant 0 : i32
    %29 = vector.broadcast %c102_i32_9 : i32 to vector<2x68xi32>
    %30 = vector.broadcast %c0_i32_10 : i32 to vector<2x68xi32>
    %31 = arith.select %28, %29, %30 : vector<2x68xi1>, vector<2x68xi32>
    %c0_11 = arith.constant 0 : index
    %c9 = arith.constant 9 : index
    %32 = vector.load %arg3[%c0_11, %c9] : memref<2x77xi32, #tpu.memory_space<vmem>>, vector<2x68xi32>
    tpu.vector_store %arg3[%c0_11, %c9], %31 {strides = array<i32>} : memref<2x77xi32, #tpu.memory_space<vmem>>, vector<2x68xi32>,
    return
  }
  func.func @transform_0(%arg0: i32) -> (i32, i32) {
    %c0_i32 = arith.constant 0 : i32
    %c0_i32_0 = arith.constant 0 : i32
    return %arg0, %c0_i32 : i32, i32
  }
  func.func @transform_1(%arg0: i32) -> (i32, i32) {
    %c0_i32 = arith.constant 0 : i32
    %c0_i32_0 = arith.constant 0 : i32
    return %arg0, %c0_i32 : i32, i32
  }
  func.func @transform_2(%arg0: i32) -> (i32, i32) {
    %c0_i32 = arith.constant 0 : i32
    %c0_i32_0 = arith.constant 0 : i32
    return %arg0, %c0_i32 : i32, i32
  }
}

</mosaic_0001>

<bundles_post_ra>
// kernel: tpu_custom_call.1
= control target key start
LH: loop header
LB: loop body
LE: loop exit
PB: predicated region body
PF: predicated region fallthrough
CT: control target
= control target key end

     0   :  { %s127_s0 = inlined_call_operand.vmem [shape: s32[2,8], index: 0, kind: input, shape index: {}]   ;;  %s128_s1 = inlined_call_operand.vmem [shape: s32[2,1], index: 1, kind: input, shape index: {}]   ;;  %s129_s2 = inlined_call_operand.hbm [shape: s32[2,77], index: 2, kind: output, shape index: {}]  }
   0x1   :  { %v13_v0 = vld [vmem:[%s128_s1] sm:$0x3] }
   0x2   :  { %7 = vsyncpa [#allocation3], 0  ;;  %v89_v1 = vmov 0   ;;  %vm14_vm0 = vcmp.gt.s32.totalorder %v13_v0, 0  ;;  %vm18_vm2 = vcmask 1024   ;;  %v90_v5 = vmov 101  }
   0x3   :  { %64 = vset.pattern.permute.xlu0 %v89_v1  ;;  %v15_v2 = vsel %vm14_vm0, %v13_v0, 0  ;;  %19 = vst.msk [vmem:[#allocation2] sm:$0x3] %vm18_vm2, %v90_v5  ;;  %v20_v6 = vlaneseq  ;;  %v12_v11 = vld [vmem:[%s127_s0] sm:$0x3]  ;;  %s91_s12 = smov 1  }
   0x4   :  { %vm16_vm1 = vcmp.lt.s32.totalorder %v15_v2, 8  ;;  %s92_s13 = smov 9   ;;  %vm36_vm6 = vcmask 66568   ;;  %s93_s14 = smov [#allocation2]   ;;  %vm43_vm7 = vcmask 623688  }
   0x5   :  { %v17_v3 = vsel %vm16_vm1, %v15_v2, 8  ;;  %v21_v7 = vand.u32 127, %v20_v6  ;;  %s51_s15 = sshll.u32 %s93_s14, 4  ;;  %s52_s15 = int_to_ptr.vmem [resolvable:$true] %s51_s15 }
   0x6   :  { %v27_v4 = vadd.s32 1, %v17_v3  ;;  %s65_s0 = scalar_lea.vmem %s52_s15, 32  ;;  %p70_p1 = scmp.lt.s32.totalorder %s52_s15, %s52_s15 }
   0x7   :  { %v22_v8 = vadd.s32 1, %v21_v7  ;;  %v38_v10 = vadd.s32 9, %v21_v7  ;;  %p66_p0 = scmp.ne.s32.totalorder %s52_s15, %s65_s0  ;;  %p71_p2 = scmp.lt.s32.totalorder %s65_s0, %s65_s0 }
   0x8   :  { %29 = vperm.xlu0 %64, %v27_v4  }
   0x9   :  { %p72_p3 = por %p71_p2, %p70_p1 }
   0xb   :  { %p73_p4 = pnand %p72_p3, %p66_p0 }
   0xc   :  { %24 = vperm.xlu0 %64, %v17_v3  }
  0x87   :  { %v30_v9 = vpop.permute.xlu0 %29 }
  0x88   :  { %vm31_vm3 = vcmp.eq.s32.totalorder %v22_v8, %v30_v9  ;;  %vm39_vm5 = vcmp.eq.s32.totalorder %v38_v10, %v30_v9 }
  0x89   :  { %v32_v13 = vsel %vm31_vm3, 102, %v89_v1  ;;  %v40_v15 = vsel %vm39_vm5, 102, %v89_v1 }
  0x8b   :  { %v25_v12 = vpop.permute.xlu0 %24 }
  0x8c   :  { %vm26_vm4 = vcmp.le.s32.totalorder %v22_v8, %v25_v12 }
  0x8d   :  { %v33_v14 = vsel %vm26_vm4, %v12_v11, %v32_v13 }
  0x8e   :  { %34 = vrot.lane.b32.xlu1 %v33_v14, %s91_s12 }
  0x92   :  { %41 = vrot.lane.b32.xlu1 %v40_v15, %s92_s13 }
 0x100   :  { %v35_v16 = vpop.permute.xlu1 %34 }
 0x101   :  { %37 = vst.msk [vmem:[#allocation2] sm:$0x3] %vm36_vm6, %v35_v16 }
 0x104   :  { %v42_v17 = vpop.permute.xlu1 %41 }
 0x105   :  { %44 = vst.msk [vmem:[#allocation2] sm:$0x3] %vm43_vm7, %v42_v17 }
 0x106   :  { %76 = shalt.err (!%p73_p4)
}
 0x107   :  { %s77_s18 = scalar_lea.hbm %s129_s2, 32 }
 0x108   :  { %p78_p5 = scmp.ne.s32.totalorder %s129_s2, %s77_s18  ;;  %p81_p6 = scmp.lt.u32.totalorder %s77_s18, %s129_s2 }
 0x10a   :  { %p83_p7 = pnand %p81_p6, %p78_p5 }
 0x10c   :  { %86 = shalt.err (!%p83_p7)
}
 0x10d   :  { %54 = dma.vmem_to_hbm [thread:$0]  %s52_s15, 32, %s129_s2, [#allocation3]  }
 0x10e   :  { %87 = dma.done.wait [#allocation3], 32  }
 0x10f   :  { %88 = vsyncadd [#allocation3], 4294967264 }
 0x110   :  { %58 = vsyncpa [#allocation3], 1 }

</bundles_post_ra>
